<compile_context>
chip_gen: v7x
topology: tpu7x:2x2x1
jax: 0.10.0
libtpu: 0.0.40
codegen_flags: <defaults>
</compile_context>

<pallas_src>
import functools

import jax
import jax.numpy as jnp
from jax.experimental import pallas as pl
from jax.experimental.pallas import tpu as pltpu

MAX_SEQ_LENGTH = 512
_LN_EPS = 1e-5


# ---------------------------------------------------------------------------
# block-size helpers (shapes are tiny in the test; structure scales up)
# ---------------------------------------------------------------------------
def _pick_batch_block(B, S, target_rows=512):
    """Rows per grid step; bb must equal B or be a multiple of 8 (BlockSpec rule)."""
    if B * S <= target_rows:
        return B
    cands = [bb for bb in range(8, B, 8) if B % bb == 0 and bb * S <= target_rows]
    return max(cands) if cands else B


def _pick_vocab_tile(V, target=2048):
    """Vocab rows per embedding step; vt must equal V or be a multiple of 8."""
    if V <= target:
        return V
    cands = [vt for vt in range(8, V, 8) if V % vt == 0 and vt <= target]
    return max(cands) if cands else V


# ---------------------------------------------------------------------------
# Kernel 1: token embedding (vocab-tiled one-hot MXU matmul) + positional add
# ---------------------------------------------------------------------------
def _embed_kernel(ids_ref, tok_ref, pos_ref, out_ref, *, vocab_tile):
    # ids_ref: (bb, S) int32   tok_ref: (vt, D)   pos_ref: (S, D)
    # out_ref: (bb, S, D) f32, resident accumulator across the vocab grid axis.
    j = pl.program_id(1)
    bb, S = ids_ref.shape
    D = tok_ref.shape[1]

    ids = ids_ref[...]                                              # (bb, S)
    # one-hot with the vocab tile on the LANE axis (full lane occupancy).
    lane = (jax.lax.broadcasted_iota(jnp.int32, (bb, S, vocab_tile), 2)
            + j * vocab_tile)
    onehot = (lane == ids[:, :, None]).astype(tok_ref.dtype)        # (bb, S, vt)
    contrib = jnp.dot(onehot.reshape(bb * S, vocab_tile), tok_ref[...],
                      preferred_element_type=jnp.float32).reshape(bb, S, D)

    @pl.when(j == 0)
    def _():
        out_ref[...] = pos_ref[...][None, :, :] + contrib

    @pl.when(j > 0)
    def _():
        out_ref[...] = out_ref[...] + contrib


def embed_forward(ids, tok_table, pos_emb, *, bb, vocab_tile):
    B, S = ids.shape
    V, D = tok_table.shape
    kernel = functools.partial(_embed_kernel, vocab_tile=vocab_tile)
    return pl.pallas_call(
        kernel,
        out_shape=jax.ShapeDtypeStruct((B, S, D), jnp.float32),
        grid_spec=pltpu.PrefetchScalarGridSpec(
            num_scalar_prefetch=0,
            grid=(B // bb, V // vocab_tile),
            in_specs=[
                pl.BlockSpec((bb, S), lambda i, j: (i, 0)),          # ids
                pl.BlockSpec((vocab_tile, D), lambda i, j: (j, 0)),  # vocab tile
                pl.BlockSpec((S, D), lambda i, j: (0, 0)),           # pos slab
            ],
            out_specs=pl.BlockSpec((bb, S, D), lambda i, j: (i, 0, 0)),
        ),
        compiler_params=pltpu.CompilerParams(
            dimension_semantics=("parallel", "arbitrary")),
    )(ids.astype(jnp.int32), tok_table.astype(jnp.float32),
      pos_emb.astype(jnp.float32))


# ---------------------------------------------------------------------------
# Kernel 2: fused transformer (all blocks + final LN + decode + mean pool)
# ---------------------------------------------------------------------------
def _layer_norm(t, g, b):
    mu = jnp.mean(t, axis=-1, keepdims=True)
    c = t - mu
    var = jnp.mean(c * c, axis=-1, keepdims=True)
    return c * jax.lax.rsqrt(var + _LN_EPS) * g + b


def _transformer_kernel(x_ref, seq_ref,
                        g1_ref, b1_ref, wq_ref, wk_ref, wv_ref, wp_ref, bp_ref,
                        g2_ref, b2_ref, w1_ref, bb1_ref, w2_ref, bb2_ref,
                        gf_ref, bf_ref, wdec_ref, bdec_ref,
                        out_ref, act_sc, attn_sc, *, num_heads):
    l = pl.program_id(1)
    n_layers = pl.num_programs(1)
    bb, S, D = act_sc.shape
    R = bb * S
    hs = D // num_heads
    f32 = jnp.float32

    # Load the embedded input once; activations stay in VMEM across layers.
    @pl.when(l == 0)
    def _():
        act_sc[...] = x_ref[...].astype(f32)

    x = act_sc[...].reshape(R, D)
    seq = seq_ref[...]                                               # (bb, 1) int32
    pad = (jax.lax.broadcasted_iota(jnp.int32, (bb, S, 1), 1)
           >= seq.reshape(bb, 1, 1))                                 # True on padding

    # ---- Block l: LN1 -> multi-head attention -> residual ------------------
    normed = _layer_norm(x, g1_ref[0], b1_ref[0])                    # (R, D)

    q = jnp.dot(normed, wq_ref[0], preferred_element_type=f32)
    k = jnp.dot(normed, wk_ref[0], preferred_element_type=f32)
    v = jnp.dot(normed, wv_ref[0], preferred_element_type=f32)
    q3 = jnp.where(pad, 0.0, q.reshape(bb, S, D))
    k3 = jnp.where(pad, 0.0, k.reshape(bb, S, D))
    v3 = v.reshape(bb, S, D)

    scale = 1.0 / (hs ** 0.5)
    for h in range(num_heads):          # static unroll; each matmul is bb-batched
        sl = slice(h * hs, (h + 1) * hs)
        s = jnp.einsum('bqd,bkd->bqk', q3[:, :, sl], k3[:, :, sl],
                       preferred_element_type=f32) * scale           # (bb, S, S)
        s = s - jnp.max(s, axis=-1, keepdims=True)
        e = jnp.exp(s)
        w = e * pl.reciprocal(jnp.sum(e, axis=-1, keepdims=True), approx=True)
        # head output written straight into its lane slab (no concatenate).
        attn_sc[:, :, sl] = jnp.einsum('bqk,bkd->bqd', w, v3[:, :, sl],
                                       preferred_element_type=f32)

    attn = attn_sc[...].reshape(R, D)
    # TODO(synk): dropout layers are identity (inference / eval mode).
    after_attn = normed + (jnp.dot(attn, wp_ref[0], preferred_element_type=f32)
                           + bp_ref[0])

    # ---- LN2 -> FFN -> residual --------------------------------------------
    normed2 = _layer_norm(after_attn, g2_ref[0], b2_ref[0])
    h1 = jnp.maximum(
        jnp.dot(normed2, w1_ref[0], preferred_element_type=f32) + bb1_ref[0], 0.0)
    y = normed2 + (jnp.dot(h1, w2_ref[0], preferred_element_type=f32) + bb2_ref[0])

    act_sc[...] = y.reshape(bb, S, D)

    # ---- last layer: final LN -> decode -> length-masked mean pool ---------
    @pl.when(l == n_layers - 1)
    def _():
        normedf = _layer_norm(y, gf_ref[...], bf_ref[...])
        logits = (jnp.dot(normedf, wdec_ref[...], preferred_element_type=f32)
                  + bdec_ref[...])                                   # (R, O)
        out_dim = logits.shape[1]
        logits = jnp.where(pad, 0.0, logits.reshape(bb, S, out_dim))
        # Matches torch semantics: division by seq_len, no zero-length guard.
        pooled = jnp.sum(logits, axis=1) / seq.astype(f32)           # (bb, O)
        out_ref[...] = pooled.astype(out_ref.dtype)


def transformer_forward(x, seq_lengths, blocks, gf, bf, wdec, bdec,
                        *, num_heads, bb):
    B, S, D = x.shape
    L = len(blocks)
    F = blocks[0]['w1'].shape[1]
    O = wdec.shape[1]

    stk = lambda name: jnp.stack([blk[name] for blk in blocks])      # (L, ...)
    seq2d = seq_lengths.reshape(B, 1).astype(jnp.int32)

    def wspec(shape):       # per-layer stacked weight: block index follows l
        nd = len(shape)
        return pl.BlockSpec((1,) + shape, lambda i, l: (l,) + (0,) * nd)

    def cspec(shape):       # constant (final-head) weight
        nd = len(shape)
        return pl.BlockSpec(shape, lambda i, l: (0,) * nd)

    kernel = functools.partial(_transformer_kernel, num_heads=num_heads)

    return pl.pallas_call(
        kernel,
        out_shape=jax.ShapeDtypeStruct((B, O), jnp.float32),
        grid_spec=pltpu.PrefetchScalarGridSpec(
            num_scalar_prefetch=0,
            grid=(B // bb, L),
            in_specs=[
                pl.BlockSpec((bb, S, D), lambda i, l: (i, 0, 0)),    # embedded x
                pl.BlockSpec((bb, 1), lambda i, l: (i, 0)),          # seq lengths
                wspec((1, D)), wspec((1, D)),                        # ln1 g, b
                wspec((D, D)), wspec((D, D)), wspec((D, D)),         # Wq, Wk, Wv
                wspec((D, D)), wspec((1, D)),                        # Wproj, bproj
                wspec((1, D)), wspec((1, D)),                        # ln2 g, b
                wspec((D, F)), wspec((1, F)),                        # W1, b1
                wspec((F, D)), wspec((1, D)),                        # W2, b2
                cspec((1, D)), cspec((1, D)),                        # ln_f g, b
                cspec((D, O)), cspec((1, O)),                        # decode W, b
            ],
            out_specs=pl.BlockSpec((bb, O), lambda i, l: (i, 0)),
            scratch_shapes=[pltpu.VMEM((bb, S, D), jnp.float32),     # resident act
                            pltpu.VMEM((bb, S, D), jnp.float32)],    # head out slab
        ),
        compiler_params=pltpu.CompilerParams(
            dimension_semantics=("parallel", "arbitrary")),
    )(x, seq2d,
      stk('g1'), stk('b1'), stk('wq'), stk('wk'), stk('wv'), stk('wp'), stk('bp'),
      stk('g2'), stk('b2'), stk('w1'), stk('bb1'), stk('w2'), stk('bb2'),
      gf, bf, wdec, bdec)


# ---------------------------------------------------------------------------
# Full model wrapper (batched 3-D path of SimpleTransformer.forward)
# ---------------------------------------------------------------------------
def simple_transformer_forward(params, ids, seq_lengths, *, num_heads):
    B, S = ids.shape
    V, D = params['tok_table'].shape
    bb = _pick_batch_block(B, S)
    vt = _pick_vocab_tile(V)

    # PositionalEmbeddings: clamp(arange(S), max=MAX_SEQ_LENGTH-1) then lookup.
    # Folded into the wrapper so only an (S, D) slab ever enters VMEM.
    pos_idx = jnp.minimum(jnp.arange(S), MAX_SEQ_LENGTH - 1)
    pos_emb = jnp.take(params['pos_table'], pos_idx, axis=0)

    x = embed_forward(ids, params['tok_table'], pos_emb, bb=bb, vocab_tile=vt)
    return transformer_forward(x, seq_lengths, params['blocks'],
                               params['gf'], params['bf'],
                               params['wdec'], params['bdec'],
                               num_heads=num_heads, bb=bb)


# ---------------------------------------------------------------------------
# Pure-JAX reference of the PyTorch forward (eval mode)
# ---------------------------------------------------------------------------
def reference_forward(params, ids, seq_lengths, *, num_heads):
    tok = jnp.take(params['tok_table'], ids, axis=0)                 # (B,S,D)
    S = ids.shape[1]
    M = params['pos_table'].shape[0]
    pos = jnp.take(params['pos_table'], jnp.minimum(jnp.arange(S), M - 1), axis=0)
    x = tok + pos[None]

    def ln(t, g, b):
        mu = t.mean(-1, keepdims=True)
        c = t - mu
        var = (c * c).mean(-1, keepdims=True)
        return c * jax.lax.rsqrt(var + _LN_EPS) * g + b

    D = x.shape[-1]
    hs = D // num_heads
    mask = (jnp.arange(S)[None, :] >= seq_lengths[:, None])[..., None]  # (B,S,1)
    for blk in params['blocks']:
        normed = ln(x, blk['g1'], blk['b1'])
        q = normed @ blk['wq']; k = normed @ blk['wk']; v = normed @ blk['wv']
        q = jnp.where(mask, 0.0, q); k = jnp.where(mask, 0.0, k)
        outs = []
        for h in range(num_heads):
            sl = slice(h * hs, (h + 1) * hs)
            s = jnp.einsum('bqd,bkd->bqk', q[..., sl], k[..., sl]) / (hs ** 0.5)
            w = jax.nn.softmax(s, axis=-1)
            w = jnp.where(jnp.isnan(w), 0.0, w)
            outs.append(jnp.einsum('bqk,bkd->bqd', w, v[..., sl]))
        attn = jnp.concatenate(outs, axis=-1)
        after_attn = normed + (attn @ blk['wp'] + blk['bp'])
        normed2 = ln(after_attn, blk['g2'], blk['b2'])
        h1 = jax.nn.relu(normed2 @ blk['w1'] + blk['bb1'])
        x = normed2 + (h1 @ blk['w2'] + blk['bb2'])
    xf = ln(x, params['gf'], params['bf'])
    logits = xf @ params['wdec'] + params['bdec']
    logits = jnp.where(mask, 0.0, logits)
    return logits.sum(axis=1) / seq_lengths[:, None].astype(jnp.float32)


if __name__ == "__main__":
    vocab_size, embedding_dim = 64, 32
    num_blocks, num_heads, output_size = 2, 4, 16
    B, S = 2, 8
    D = embedding_dim

    keys = iter(jax.random.split(jax.random.PRNGKey(0), 32))

    def nrm(shape, scale=0.1):
        return scale * jax.random.normal(next(keys), shape, jnp.float32)

    tok_table = nrm((vocab_size, D), 1.0).at[0].set(0.0)   # padding_idx=0 row zeroed
    pos_table = nrm((MAX_SEQ_LENGTH, D), 1.0)

    blocks = []
    for _ in range(num_blocks):
        blocks.append(dict(
            g1=jnp.ones((1, D), jnp.float32), b1=jnp.zeros((1, D), jnp.float32),
            wq=nrm((D, D)), wk=nrm((D, D)), wv=nrm((D, D)),
            wp=nrm((D, D)), bp=nrm((1, D)),
            g2=jnp.ones((1, D), jnp.float32), b2=jnp.zeros((1, D), jnp.float32),
            w1=nrm((D, 4 * D)), bb1=nrm((1, 4 * D)),
            w2=nrm((4 * D, D)), bb2=nrm((1, D)),
        ))
    params = dict(tok_table=tok_table, pos_table=pos_table, blocks=blocks,
                  gf=jnp.ones((1, D), jnp.float32), bf=jnp.zeros((1, D), jnp.float32),
                  wdec=nrm((D, output_size)), bdec=nrm((1, output_size)))

    ids = jax.random.randint(next(keys), (B, S), 0, vocab_size, dtype=jnp.int32)
    seq_lengths = jnp.array([S, 5], jnp.int32)   # second sequence is padded

    out = simple_transformer_forward(params, ids, seq_lengths, num_heads=num_heads)
    out = jax.block_until_ready(out)

    ref = reference_forward(params, ids, seq_lengths, num_heads=num_heads)

    assert out.shape == (B, output_size)
    assert out.dtype == jnp.float32
    err = float(jnp.max(jnp.abs(out - ref)))
    # Tolerance accounts for the EUP approximate-reciprocal softmax epilogue.
    assert jnp.allclose(out, ref, atol=5e-3, rtol=5e-3), f"max abs err {err}"
    print("KERNEL_OK")
</pallas_src>

<mosaic_0001>
module attributes {stable_mosaic.version = 11 : i64} {
  func.func @_embed_kernel(%arg0: i32, %arg1: i32, %arg2: memref<2x8xi32, #tpu.memory_space<vmem>>, %arg3: memref<64x32xf32, #tpu.memory_space<vmem>>, %arg4: memref<8x32xf32, #tpu.memory_space<vmem>>, %arg5: memref<2x8x32xf32, #tpu.memory_space<vmem>>) attributes {dimension_semantics = [#tpu.dimension_semantics<parallel>, #tpu.dimension_semantics<arbitrary>], iteration_bounds = array<i64: 1, 1>, scalar_prefetch = 0 : i64, scratch_operands = 0 : i64, tpu.core_type = #tpu.core_type<tc>, window_params = [{transform_indices = @transform_0, window_bounds = array<i64: 2, 8>}, {transform_indices = @transform_1, window_bounds = array<i64: 64, 32>}, {pipeline_mode = #tpu.pipeline_mode<synchronous>, transform_indices = @transform_2, window_bounds = array<i64: 8, 32>}, {transform_indices = @transform_3, window_bounds = array<i64: 2, 8, 32>}]} {
    %c0 = arith.constant 0 : index
    %c0_0 = arith.constant 0 : index
    %0 = vector.load %arg2[%c0, %c0_0] : memref<2x8xi32, #tpu.memory_space<vmem>>, vector<2x8xi32>
    %1 = tpu.iota {dimensions = array<i32: 2>} : vector<2x8x64xi32>
    %c64_i32 = arith.constant 64 : i32
    %2 = arith.muli %arg1, %c64_i32 : i32
    %3 = vector.broadcast %2 : i32 to vector<2x8x64xi32>
    %4 = arith.addi %1, %3 : vector<2x8x64xi32>
    %5 = vector.shape_cast %0 : vector<2x8xi32> to vector<2x8x1xi32>
    %6 = vector.broadcast %5 : vector<2x8x1xi32> to vector<2x8x64xi32>
    %7 = arith.cmpi eq, %4, %6 : vector<2x8x64xi32>
    %8 = arith.extui %7 : vector<2x8x64xi1> to vector<2x8x64xi32>
    %9 = arith.sitofp %8 : vector<2x8x64xi32> to vector<2x8x64xf32>
    %10 = vector.shape_cast %9 : vector<2x8x64xf32> to vector<16x64xf32>
    %c0_1 = arith.constant 0 : index
    %c0_2 = arith.constant 0 : index
    %11 = vector.load %arg3[%c0_1, %c0_2] : memref<64x32xf32, #tpu.memory_space<vmem>>, vector<64x32xf32>
    %cst = arith.constant dense<0.000000e+00> : vector<16x32xf32>
    %12 = tpu.matmul %10, %11, %cst {dimension_numbers = #tpu.dot_dimension_numbers<[1], [0], [0], [1], [0, 0, 1, 1], [], []>} : vector<16x64xf32>, vector<64x32xf32>, vector<16x32xf32> -> vector<16x32xf32>
    %13 = vector.shape_cast %12 : vector<16x32xf32> to vector<2x8x32xf32>
    %c0_i32 = arith.constant 0 : i32
    %14 = arith.cmpi eq, %arg1, %c0_i32 : i32
    %15 = arith.extui %14 : i1 to i32
    %c0_i32_3 = arith.constant 0 : i32
    %16 = arith.cmpi ne, %15, %c0_i32_3 : i32
    scf.if %16 {
      %c0_6 = arith.constant 0 : index
      %c0_7 = arith.constant 0 : index
      %20 = vector.load %arg4[%c0_6, %c0_7] : memref<8x32xf32, #tpu.memory_space<vmem>>, vector<8x32xf32>
      %21 = vector.shape_cast %20 : vector<8x32xf32> to vector<1x8x32xf32>
      %22 = vector.broadcast %21 : vector<1x8x32xf32> to vector<2x8x32xf32>
      %23 = arith.addf %22, %13 : vector<2x8x32xf32>
      %c0_8 = arith.constant 0 : index
      %c0_9 = arith.constant 0 : index
      %c0_10 = arith.constant 0 : index
      %24 = vector.load %arg5[%c0_8, %c0_9, %c0_10] : memref<2x8x32xf32, #tpu.memory_space<vmem>>, vector<2x8x32xf32>
      tpu.vector_store %arg5[%c0_8, %c0_9, %c0_10], %23 {strides = array<i32>} : memref<2x8x32xf32, #tpu.memory_space<vmem>>, vector<2x8x32xf32>,
    } else {
    }
    %c0_i32_4 = arith.constant 0 : i32
    %17 = arith.cmpi sgt, %arg1, %c0_i32_4 : i32
    %18 = arith.extui %17 : i1 to i32
    %c0_i32_5 = arith.constant 0 : i32
    %19 = arith.cmpi ne, %18, %c0_i32_5 : i32
    scf.if %19 {
      %c0_6 = arith.constant 0 : index
      %c0_7 = arith.constant 0 : index
      %c0_8 = arith.constant 0 : index
      %20 = vector.load %arg5[%c0_6, %c0_7, %c0_8] : memref<2x8x32xf32, #tpu.memory_space<vmem>>, vector<2x8x32xf32>
      %21 = arith.addf %20, %13 : vector<2x8x32xf32>
      %c0_9 = arith.constant 0 : index
      %c0_10 = arith.constant 0 : index
      %c0_11 = arith.constant 0 : index
      %22 = vector.load %arg5[%c0_9, %c0_10, %c0_11] : memref<2x8x32xf32, #tpu.memory_space<vmem>>, vector<2x8x32xf32>
      tpu.vector_store %arg5[%c0_9, %c0_10, %c0_11], %21 {strides = array<i32>} : memref<2x8x32xf32, #tpu.memory_space<vmem>>, vector<2x8x32xf32>,
    } else {
    }
    return
  }
  func.func @transform_0(%arg0: i32, %arg1: i32) -> (i32, i32) {
    %c0_i32 = arith.constant 0 : i32
    %c0_i32_0 = arith.constant 0 : i32
    return %arg0, %c0_i32 : i32, i32
  }
  func.func @transform_1(%arg0: i32, %arg1: i32) -> (i32, i32) {
    %c0_i32 = arith.constant 0 : i32
    %c0_i32_0 = arith.constant 0 : i32
    return %arg1, %c0_i32 : i32, i32
  }
  func.func @transform_2(%arg0: i32, %arg1: i32) -> (i32, i32) {
    %c0_i32 = arith.constant 0 : i32
    %c0_i32_0 = arith.constant 0 : i32
    %c0_i32_1 = arith.constant 0 : i32
    return %c0_i32, %c0_i32_0 : i32, i32
  }
  func.func @transform_3(%arg0: i32, %arg1: i32) -> (i32, i32, i32) {
    %c0_i32 = arith.constant 0 : i32
    %c0_i32_0 = arith.constant 0 : i32
    %c0_i32_1 = arith.constant 0 : i32
    return %arg0, %c0_i32, %c0_i32_0 : i32, i32, i32
  }
}

</mosaic_0001>

<bundles_post_ra>
// kernel: tpu_custom_call.1
= control target key start
LH: loop header
LB: loop body
LE: loop exit
PB: predicated region body
PF: predicated region fallthrough
CT: control target
= control target key end

     0   :  { %v16_v0 = vlaneseq  ;;  %s311_s0 = inlined_call_operand.vmem [shape: s32[2,8], index: 0, kind: input, shape index: {}]   ;;  %s312_s1 = inlined_call_operand.vmem [shape: f32[64,32], index: 1, kind: input, shape index: {}]   ;;  %s313_s2 = inlined_call_operand.vmem [shape: f32[8,32], index: 2, kind: input, shape index: {}]   ;;  %s314_s3 = inlined_call_operand.hbm [shape: f32[2,8,32], index: 3, kind: output, shape index: {}]  }
   0x1   :  { %v41_v1 = vld [vmem:[%s312_s1] sm:$0xff]  ;;  %v42_v2 = vld [vmem:[%s312_s1 + $0x8] sm:$0xff]  ;;  %v43_v4 = vld [vmem:[%s312_s1 + $0x10] sm:$0xff] }
   0x2   :  { %v201_v3 = vpack.c.bf16 %v42_v2, %v41_v1  ;;  %v44_v5 = vld [vmem:[%s312_s1 + $0x18] sm:$0xff]  ;;  %v22_v6 = vshrl.u32 %v16_v0, 7  ;;  %v45_v8 = vld [vmem:[%s312_s1 + $0x20] sm:$0xff]  ;;  %v46_v9 = vld [vmem:[%s312_s1 + $0x28] sm:$0xff] }
   0x3   :  { %v205_v7 = vpack.c.bf16 %v44_v5, %v43_v4  ;;  %v15_v10 = vld [vmem:[%s311_s0] sm:$0x3] }
   0x4   :  { %202 = vmatprep.subr.bf16.mxu0 %v201_v3 }
   0x5   :  { %8 = vsyncpa [#allocation3], 0  ;;  %v23_v11 = vsub.s32 0, %v22_v6  ;;  %v30_v12 = vsub.s32 1, %v22_v6  ;;  %204 = vmatpush3.bf16.msra.mxu0 %v201_v3  ;;  %v209_v13 = vpack.c.bf16 %v46_v9, %v45_v8  ;;  %v47_v15 = vld [vmem:[%s312_s1 + $0x30] sm:$0xff]  ;;  %v48_v16 = vld [vmem:[%s312_s1 + $0x38] sm:$0xff] }
   0x6   :  { %206 = vmatprep.subr.bf16.mxu0 %v205_v7  ;;  %v213_v18 = vpack.c.bf16 %v48_v16, %v47_v15  ;;  %v17_v19 = vand.u32 127, %v16_v0  ;;  %vm49_vm0 = vcmask 523264   ;;  %v245_v21 = vmov 0.0   ;;  %v135_v25 = vld [vmem:[%s313_s2] sm:$0xff]  ;;  %s246_s30 = smov [#allocation2]  }
   0x7   :  { %v24_v14 = vrot.slane %v15_v10, %v23_v11  ;;  %v31_v17 = vrot.slane %v15_v10, %v30_v12  ;;  %s157_s4 = sshll.u32 %s246_s30, 4  ;;  %vm138_vm3 = vcmask 261120   ;;  %s158_s4 = int_to_ptr.vmem [resolvable:$true] %s157_s4 }
   0x8   :  { %s221_s5 = scalar_lea.vmem %s158_s4, 256  ;;  %p226_p1 = scmp.lt.s32.totalorder %s158_s4, %s158_s4 }
   0x9   :  { %26 = vbcast.lane.b32.xlu0 %v24_v14, 256  ;;  %208 = vmatpush3.bf16.msra.mxu0 %v205_v7  ;;  %p222_p0 = scmp.ne.s32.totalorder %s158_s4, %s221_s5  ;;  %p227_p2 = scmp.lt.s32.totalorder %s221_s5, %s221_s5 }
   0xa   :  { %210 = vmatprep.subr.bf16.mxu0 %v209_v13 }
   0xb   :  { %p228_p3 = por %p227_p2, %p226_p1 }
   0xd   :  { %33 = vbcast.lane.b32.xlu0 %v31_v17, 256  ;;  %212 = vmatpush3.bf16.msra.mxu0 %v209_v13  ;;  %p229_p4 = pnand %p228_p3, %p222_p0 }
   0xe   :  { %214 = vmatprep.subr.bf16.mxu0 %v213_v18 }
  0x11   :  { %216 = vmatpush3.bf16.msra.mxu0 %v213_v18 }
  0x7b   :  { %v27_v20 = vpop.permute.xlu0 %26 }
  0x7c   :  { %vm35_vm1 = vcmp.eq.s32.totalorder %v17_v19, %v27_v20 }
  0x7d   :  { %v168_v22 = vsel %vm35_vm1, 1.0, %v245_v21 }
  0x7e   :  { %198 = vmatprep.mubr.msk.f32.mxu0 %vm49_vm0, %v168_v22 }
  0x7f   :  { %v34_v23 = vpop.permute.xlu0 %33 }
  0x80   :  { %vm36_vm2 = vcmp.eq.s32.totalorder %v17_v19, %v34_v23 }
  0x81   :  { %v169_v24 = vsel %vm36_vm2, 1.0, %v245_v21 }
  0x82   :  { %199 = vmatmul.mubr.msk.f32.vlgmr.msra.gmra.mrb[0].mxu0 %vm49_vm0, %v169_v24 }
 0x155   :  { %v200_v26 = vpop.f32.mrb[0].mxu0 }
 0x156   :  { %v137_v27 = vadd.f32 %v200_v26, %v135_v25  ;;  %v122_v28 = vpop.f32.mrb[1].mxu0 }
 0x157   :  { %v136_v29 = vadd.f32 %v135_v25, %v122_v28 }
 0x158   :  { %140 = vst.msk [vmem:[#allocation2 + $0x8] sm:$0xff] %vm138_vm3, %v137_v27 }
 0x159   :  { %139 = vst.msk [vmem:[#allocation2] sm:$0xff] %vm138_vm3, %v136_v29 }
 0x15a   :  { %232 = shalt.err (!%p229_p4)
}
 0x15b   :  { %s233_s2 = scalar_lea.hbm %s314_s3, 256 }
 0x15c   :  { %p234_p5 = scmp.ne.s32.totalorder %s314_s3, %s233_s2  ;;  %p237_p6 = scmp.lt.u32.totalorder %s233_s2, %s314_s3 }
 0x15e   :  { %p239_p7 = pnand %p237_p6, %p234_p5 }
 0x160   :  { %242 = shalt.err (!%p239_p7)
}
 0x161   :  { %s247_s12 = smov 128   ;;  %s248_s13 = smov 8  }
 0x162   :  { %163 = dma.vmem_to_hbm [thread:$0]  %s158_s4, 256, %s314_s3, [#allocation3], %s247_s12, %s247_s12, %s248_s13  }
 0x163   :  { %243 = dma.done.wait [#allocation3], 256  }
 0x164   :  { %244 = vsyncadd [#allocation3], 4294967040 }
 0x165   :  { %167 = vsyncpa [#allocation3], 1 }

</bundles_post_ra>
